<compile_context>
chip_gen: v7x
topology: tpu7x:2x2x1
jax: 0.10.0
libtpu: 0.0.40
codegen_flags: <defaults>
</compile_context>

<pallas_src>
import functools

import jax
import jax.numpy as jnp
from jax.experimental import pallas as pl
from jax.experimental.pallas import tpu as pltpu


def _round_up(x, m):
    return ((x + m - 1) // m) * m


def _pick_batch_tile(b, cap=256):
    """Batch tile for 2-D outputs: full extent for small B, else a multiple of 8."""
    if b <= cap:
        return b
    for bt in (256, 128, 64, 32, 16, 8):
        if b % bt == 0:
            return bt
    return b  # full extent fallback (legal, just a big block)


# --------------------------------------------------------------------------- #
# Kernel helpers
# --------------------------------------------------------------------------- #
def _store_grouped(out_ref, xs, widths):
    """Store per-feature slices into out_ref[:, lo:hi] with lane-dense grouping.

    Consecutive sub-128 pieces whose group starts AND ends on a 128-lane boundary
    are concatenated in-register and emitted as one unmasked store instead of
    several lane-shifted masked stores (e.g. the two 64-wide features at offsets
    512/576 become a single aligned 128-wide store).
    """
    lo = 0
    group, group_lo = [], 0
    n = len(xs)
    for idx, (x, w) in enumerate(zip(xs, widths)):
        if not group:
            group_lo = lo
        group.append(x)
        lo += w
        aligned = (group_lo % 128 == 0) and ((lo - group_lo) % 128 == 0)
        if aligned or idx == n - 1:
            val = group[0] if len(group) == 1 else jnp.concatenate(group, axis=-1)
            out_ref[:, group_lo:lo] = val.astype(out_ref.dtype)
            group = []


# --------------------------------------------------------------------------- #
# Kernels
# --------------------------------------------------------------------------- #
def _concat_kernel(*refs, widths):
    """torch.cat(feature_list, dim=2).squeeze(1) via grouped slice stores."""
    out_ref = refs[-1]
    xs = [r[:, 0, :] for r in refs[:-1]]
    _store_grouped(out_ref, xs, widths)


def _img_mean_kernel(img_ref, out_ref, acc_ref, *, inv_t):
    """Token-mean reduction: [B, T, C] -> [B, C].

    Grid = (B tiles, C tiles, T tiles); T is the trailing 'arbitrary' reduction
    axis.  f32 accumulation in VMEM scratch; divide folded into one multiply by
    the compile-time constant 1/T at the final store.
    """
    t = pl.program_id(2)

    @pl.when(t == 0)
    def _():
        acc_ref[...] = jnp.zeros_like(acc_ref)

    acc_ref[...] += jnp.sum(img_ref[...].astype(jnp.float32), axis=1)

    @pl.when(t == pl.num_programs(2) - 1)
    def _():
        out_ref[...] = (acc_ref[...] * inv_t).astype(out_ref.dtype)


def _mh_linear_kernel(x_ref, w_ref, b_ref, out_ref):
    """All heads of one (or several merged) classifier families as one MXU matmul.

    x: [bt, Cin], w: [Cin, Cout_pad] (heads stacked + zero-padded to 128 lanes),
    b: [1, Cout_pad], out: [bt, Cout_pad]  (unmasked lane-dense store).
    """
    acc = jnp.dot(x_ref[...].astype(w_ref.dtype), w_ref[...],
                  preferred_element_type=jnp.float32)
    out_ref[...] = (acc + b_ref[...].astype(jnp.float32)).astype(out_ref.dtype)


def _fused_head_kernel(*refs, n_feats, widths, ess_index):
    """Fused concat + invade/surgery + essential classifiers (one pallas_call).

    Inputs : per-feature [bt, 1, C_x] refs, packed W_is/b_is, packed W_ess/b_ess.
    Outputs: feat [bt, C_total], invade+surgery logits [bt, Cout_is_pad],
             essential logits [bt, Cout_ess_pad].
    """
    feat_refs = refs[:n_feats]
    w_is_ref, b_is_ref, w_ess_ref, b_ess_ref = refs[n_feats:n_feats + 4]
    feat_out, is_out, ess_out = refs[n_feats + 4:]

    xs = [r[:, 0, :] for r in feat_refs]

    # ---- feat output: grouped lane-dense slice stores (no fused VMEM temp) ----
    _store_grouped(feat_out, xs, widths)

    # ---- invade + surgery logits: split-K over the per-feature slices ----
    acc = jnp.zeros(is_out.shape, jnp.float32)
    lo = 0
    for x, w in zip(xs, widths):
        acc += jnp.dot(x.astype(w_is_ref.dtype), w_is_ref[lo:lo + w, :],
                       preferred_element_type=jnp.float32)
        lo += w
    is_out[...] = (acc + b_is_ref[...].astype(jnp.float32)).astype(is_out.dtype)

    # ---- essential logits: img feature only (torch: img_feat.squeeze(1)) ----
    x_e = xs[ess_index]
    acc_e = jnp.dot(x_e.astype(w_ess_ref.dtype), w_ess_ref[...],
                    preferred_element_type=jnp.float32)
    ess_out[...] = (acc_e + b_ess_ref[...].astype(jnp.float32)).astype(ess_out.dtype)


# --------------------------------------------------------------------------- #
# Pallas wrappers
# --------------------------------------------------------------------------- #
def fuse_concat(feature_list):
    """torch.cat(feature_list, dim=2).squeeze(1); every feature must have T == 1."""
    B = int(feature_list[0].shape[0])
    for f in feature_list:
        assert f.ndim == 3 and f.shape[0] == B and f.shape[1] == 1, (
            "concat fusion expects [B, 1, C] features")
    widths = tuple(int(f.shape[2]) for f in feature_list)
    c_total = sum(widths)

    out_dtype = feature_list[0].dtype
    for f in feature_list[1:]:
        out_dtype = jnp.promote_types(out_dtype, f.dtype)

    b_tile = _pick_batch_tile(B)
    grid = (B // b_tile,)
    isz = jnp.dtype(out_dtype).itemsize

    return pl.pallas_call(
        functools.partial(_concat_kernel, widths=widths),
        out_shape=jax.ShapeDtypeStruct((B, c_total), out_dtype),
        grid=grid,
        in_specs=[pl.BlockSpec((b_tile, 1, w), lambda i: (i, 0, 0)) for w in widths],
        out_specs=pl.BlockSpec((b_tile, c_total), lambda i: (i, 0)),
        compiler_params=pltpu.CompilerParams(dimension_semantics=("parallel",)),
        cost_estimate=pl.CostEstimate(flops=0, transcendentals=0,
                                      bytes_accessed=int(2 * B * c_total * isz)),
    )(*feature_list)


def fuse_img_mean(img_feat, *, vmem_block_bytes=4 * 1024 * 1024):
    """torch.mean(img_feat, dim=1, keepdim=True).squeeze(1): [B, T, C] -> [B, C].

    Full-extent block dims are used whenever legal so ragged shapes need no
    jnp.pad copy; padding only happens for a dim that is ragged AND tiled.
    vmem_block_bytes (per input block, x2 for double buffering) is kept at 4 MiB
    so the same config is safe on v5e/v6e/v7x scoped-VMEM defaults.
    """
    B, T, C = (int(d) for d in img_feat.shape)
    out_dtype = img_feat.dtype
    itemsize = jnp.dtype(img_feat.dtype).itemsize

    # --- channel tile: full extent unless C is large and 128-aligned ---
    if C % 128 == 0 and C > 512:
        c_tile = 128
        cand = 256
        while cand <= 512:
            if C % cand == 0:
                c_tile = cand
            cand += 128
    else:
        c_tile = C  # full-extent last dim is always legal (even non-128)

    # --- batch tile (output second-to-last dim: multiple of 8 OR full extent) ---
    Bp = B
    if B <= 64:
        b_tile = B
    else:
        b_tile = None
        for cand in (64, 56, 48, 40, 32, 24, 16, 8):
            if B % cand == 0:
                b_tile = cand
                break
        if b_tile is None:          # rare: large, non-8-divisible batch
            b_tile = 8
            Bp = _round_up(B, 8)

    # --- token tile: prefer full extent; otherwise a multiple of 8 that divides T ---
    def block_bytes(tt):
        return b_tile * tt * c_tile * itemsize

    Tp = T
    if block_bytes(T) <= vmem_block_bytes:
        t_tile = T
    else:
        t_tile = None
        best_fit = 8
        tt = 8
        while tt <= T and block_bytes(tt) <= vmem_block_bytes:
            best_fit = tt
            if T % tt == 0:
                t_tile = tt
            tt += 8
        if t_tile is None:          # no exact divisor fits: minimal zero-pad on T only
            t_tile = best_fit
            Tp = _round_up(T, t_tile)

    x = img_feat
    if Bp != B or Tp != T:
        x = jnp.pad(x, ((0, Bp - B), (0, Tp - T), (0, 0)))

    grid = (Bp // b_tile, C // c_tile, Tp // t_tile)

    cost = pl.CostEstimate(
        flops=int(Bp * Tp * C + Bp * C),
        transcendentals=0,
        bytes_accessed=int(Bp * Tp * C * itemsize + Bp * C * itemsize))

    out = pl.pallas_call(
        functools.partial(_img_mean_kernel, inv_t=1.0 / T),
        out_shape=jax.ShapeDtypeStruct((Bp, C), out_dtype),
        grid=grid,
        in_specs=[pl.BlockSpec((b_tile, t_tile, c_tile), lambda b, c, t: (b, t, c))],
        out_specs=pl.BlockSpec((b_tile, c_tile), lambda b, c, t: (b, c)),
        scratch_shapes=[pltpu.VMEM((b_tile, c_tile), jnp.float32)],
        compiler_params=pltpu.CompilerParams(
            dimension_semantics=("parallel", "parallel", "arbitrary")),
        cost_estimate=cost,
    )(x)
    return out[:B] if Bp != B else out


def packed_multihead_linear(x, w_packed, b_packed):
    """x @ W_packed + b_packed with a batch-tiled 'parallel' grid.

    W/b are pre-packed at init (heads stacked along the output dim, zero-padded
    to a multiple of 128 lanes) so the kernel is one MXU matmul + one unmasked
    lane-dense store.
    """
    B, c_in = (int(d) for d in x.shape)
    c_out_pad = int(w_packed.shape[1])
    b_tile = _pick_batch_tile(B)
    grid = (B // b_tile,)
    isz = jnp.dtype(x.dtype).itemsize

    cost = pl.CostEstimate(
        flops=int(2 * B * c_in * c_out_pad),
        transcendentals=0,
        bytes_accessed=int(B * c_in * isz + B * c_out_pad * isz
                           + w_packed.size * w_packed.dtype.itemsize
                           + b_packed.size * b_packed.dtype.itemsize))

    return pl.pallas_call(
        _mh_linear_kernel,
        out_shape=jax.ShapeDtypeStruct((B, c_out_pad), x.dtype),
        grid=grid,
        in_specs=[pl.BlockSpec((b_tile, c_in), lambda i: (i, 0)),
                  pl.BlockSpec((c_in, c_out_pad), lambda i: (0, 0)),
                  pl.BlockSpec((1, c_out_pad), lambda i: (0, 0))],
        out_specs=pl.BlockSpec((b_tile, c_out_pad), lambda i: (i, 0)),
        compiler_params=pltpu.CompilerParams(dimension_semantics=("parallel",)),
        cost_estimate=cost,
    )(x, w_packed, b_packed)


def _apply_packed_linear(x, w_packed, b_packed):
    """Packed linear over the last dim; supports 2-D [B, C] and 3-D [B, T, C]."""
    if x.ndim == 2:
        return packed_multihead_linear(x, w_packed, b_packed)
    lead = x.shape[:-1]
    y = packed_multihead_linear(x.reshape((-1, x.shape[-1])), w_packed, b_packed)
    return y.reshape(lead + (y.shape[-1],))


def fused_concat_head(feature_list, w_is, b_is, w_ess, b_ess, *, ess_index=0):
    """Single pallas_call: concat fusion + merged invade/surgery + essential heads."""
    B = int(feature_list[0].shape[0])
    widths = tuple(int(f.shape[2]) for f in feature_list)
    c_total = sum(widths)
    cout_is = int(w_is.shape[1])
    cin_ess = int(w_ess.shape[0])
    cout_ess = int(w_ess.shape[1])
    assert int(w_is.shape[0]) == c_total
    assert widths[ess_index] == cin_ess

    out_dtype = feature_list[0].dtype
    for f in feature_list[1:]:
        out_dtype = jnp.promote_types(out_dtype, f.dtype)

    b_tile = _pick_batch_tile(B)
    grid = (B // b_tile,)
    n = len(feature_list)
    isz = jnp.dtype(out_dtype).itemsize
    wsz = w_is.dtype.itemsize

    in_specs = ([pl.BlockSpec((b_tile, 1, w), lambda i: (i, 0, 0)) for w in widths]
                + [pl.BlockSpec((c_total, cout_is), lambda i: (0, 0)),
                   pl.BlockSpec((1, cout_is), lambda i: (0, 0)),
                   pl.BlockSpec((cin_ess, cout_ess), lambda i: (0, 0)),
                   pl.BlockSpec((1, cout_ess), lambda i: (0, 0))])
    out_shape = (jax.ShapeDtypeStruct((B, c_total), out_dtype),
                 jax.ShapeDtypeStruct((B, cout_is), out_dtype),
                 jax.ShapeDtypeStruct((B, cout_ess), out_dtype))
    out_specs = (pl.BlockSpec((b_tile, c_total), lambda i: (i, 0)),
                 pl.BlockSpec((b_tile, cout_is), lambda i: (i, 0)),
                 pl.BlockSpec((b_tile, cout_ess), lambda i: (i, 0)))

    cost = pl.CostEstimate(
        flops=int(2 * B * (c_total * cout_is + cin_ess * cout_ess)),
        transcendentals=0,
        bytes_accessed=int(2 * B * c_total * isz + B * (cout_is + cout_ess) * isz
                           + (w_is.size + b_is.size + w_ess.size + b_ess.size) * wsz))

    return pl.pallas_call(
        functools.partial(_fused_head_kernel, n_feats=n, widths=widths,
                          ess_index=ess_index),
        out_shape=out_shape,
        grid=grid,
        in_specs=in_specs,
        out_specs=out_specs,
        compiler_params=pltpu.CompilerParams(dimension_semantics=("parallel",)),
        cost_estimate=cost,
    )(*feature_list, w_is, b_is, w_ess, b_ess)


# --------------------------------------------------------------------------- #
# Module ports (JAX/Pallas equivalents of the PyTorch classes)
# --------------------------------------------------------------------------- #
def _pack_heads(weights, biases):
    """Stack per-head [c_out_i, c_in] weights into W [c_in, pad128(sum c_out)], b [1, pad]."""
    w = jnp.concatenate([w.T for w in weights], axis=1)
    b = jnp.concatenate(biases, axis=0)[None, :]
    c_out = int(w.shape[1])
    c_out_pad = _round_up(c_out, 128)
    if c_out_pad != c_out:
        w = jnp.pad(w, ((0, 0), (0, c_out_pad - c_out)))
        b = jnp.pad(b, ((0, 0), (0, c_out_pad - c_out)))
    return w, b


class MMFF:
    """Multi-modal feature fusion dispatcher."""

    _SUPPORTED = ("concat", "cat", "concatenate", "img", "image", "blood", "others")

    def __init__(self, net_fusion: str):
        self.net_fusion = net_fusion.lower()
        if self.net_fusion not in self._SUPPORTED:
            # TODO(synk): 'mlp', 'attention', 'mlp_mixer*', 'attention_mixer' depend on
            # submodules (MLP_fusion, AttentionImgFusion, MLP_Mixer, ...) not provided.
            raise NotImplementedError(
                "Net fusion module {} is not implemented in this Pallas port".format(net_fusion))

    def __call__(self, feature_dict):
        img_feat = feature_dict.get("img_feature", None)
        blood_feat = feature_dict.get("blood_feature", None)
        others_feat = feature_dict.get("others_feature", None)
        feature_list = [f for f in (img_feat, blood_feat, others_feat) if f is not None]

        if self.net_fusion in ("concat", "cat", "concatenate"):
            return fuse_concat(feature_list)
        elif self.net_fusion in ("img", "image"):
            return fuse_img_mean(img_feat)
        elif self.net_fusion == "blood":
            return blood_feat
        else:
            return others_feat


class MHCLS:
    """Multi-head classifiers (invade / surgery / essential) with pre-packed weights."""
    # TODO(synk): nn.Dropout is train-time stochastic; treated as inference identity.

    def __init__(self, key, num_heads, in_channels, invade_classes, surgery_classes,
                 essential_classes, mid_channels=512, dtype=jnp.float32):
        self.num_heads = num_heads
        self.in_channels = in_channels
        self.mid_channels = mid_channels
        self.invade_classes = invade_classes
        self.surgery_classes = surgery_classes
        self.essential_classes = essential_classes

        def init(k, c_out, c_in):
            scale = 1.0 / (c_in ** 0.5)
            wk, bk = jax.random.split(k)
            w = jax.random.uniform(wk, (c_out, c_in), dtype, -scale, scale)
            b = jax.random.uniform(bk, (c_out,), dtype, -scale, scale)
            return w, b

        k_inv, k_sur, k_ess = jax.random.split(key, 3)
        self.invade = [init(k, invade_classes, in_channels)
                       for k in jax.random.split(k_inv, num_heads)]
        self.surgery = [init(k, surgery_classes, in_channels)
                        for k in jax.random.split(k_sur, num_heads)]
        self.essential = [init(k, essential_classes, mid_channels)
                          for k in jax.random.split(k_ess, num_heads)]

        # --- pre-packed, lane-dense weights (packed ONCE here, not per forward) ---
        # invade + surgery merged: they share the same input x, so one matmul.
        self.w_is, self.b_is = _pack_heads(
            [w for w, _ in self.invade] + [w for w, _ in self.surgery],
            [b for _, b in self.invade] + [b for _, b in self.surgery])
        self.w_ess, self.b_ess = _pack_heads(
            [w for w, _ in self.essential], [b for _, b in self.essential])

    # ---- result splitting (padded logits -> per-head predictions) ----
    def _split_invade_surgery(self, logits):
        nh, ic, sc = self.num_heads, self.invade_classes, self.surgery_classes
        invade = [logits[..., i * ic:(i + 1) * ic] for i in range(nh)]
        off = nh * ic
        surgery = [logits[..., off + i * sc: off + (i + 1) * sc] for i in range(nh)]
        return invade, surgery

    def _split_essential(self, logits):
        nh, ec = self.num_heads, self.essential_classes
        return [logits[..., i * ec:(i + 1) * ec] for i in range(nh)]

    def __call__(self, x, img_feat):
        # torch's img_feat.squeeze(1) only drops the token dim when it is 1;
        # for T > 1 the essential heads act on the last dim of the 3-D tensor.
        if img_feat.ndim == 3 and img_feat.shape[1] == 1:
            img_sq = img_feat[:, 0, :]
        else:
            img_sq = img_feat
        logits_is = _apply_packed_linear(x, self.w_is, self.b_is)
        logits_ess = _apply_packed_linear(img_sq, self.w_ess, self.b_ess)
        pred_invade, pred_surgery = self._split_invade_surgery(logits_is)
        pred_essential = self._split_essential(logits_ess)
        return pred_invade, pred_surgery, pred_essential, x

    def fused_concat_forward(self, feature_list, ess_index=0):
        feat, logits_is, logits_ess = fused_concat_head(
            feature_list, self.w_is, self.b_is, self.w_ess, self.b_ess,
            ess_index=ess_index)
        pred_invade, pred_surgery = self._split_invade_surgery(logits_is)
        pred_essential = self._split_essential(logits_ess)
        return feat, pred_invade, pred_surgery, pred_essential


class Custom_Model_2D:
    """Fusion + multi-head classifier head of Custom_Model_2D.

    Consumes pre-encoded features (encoders are external submodules).
    """
    # TODO(synk): img/blood/others encoders (ResNet/Swin/ViT/CvT, MLP, CLIP_Encoder)
    #             and pred_seg are not defined in the provided source.

    def __init__(self, key, net_fusion="concat", num_heads=2, classifier_inchannel=640,
                 invade_classes=3, surgery_classes=3, essential_classes=2,
                 mid_channels=512):
        self.net_fusion = net_fusion.lower()
        self.fusion = MMFF(net_fusion)
        self.classifier = MHCLS(key, num_heads, classifier_inchannel, invade_classes,
                                surgery_classes, essential_classes, mid_channels)

    def _can_fuse(self, feature_list):
        if self.net_fusion not in ("concat", "cat", "concatenate") or not feature_list:
            return False
        if any(f.ndim != 3 or f.shape[1] != 1 for f in feature_list):
            return False
        widths = [int(f.shape[2]) for f in feature_list]
        return (sum(widths) == int(self.classifier.w_is.shape[0])
                and widths[0] == int(self.classifier.w_ess.shape[0]))

    def __call__(self, feature_dict):
        img_feature = feature_dict["img_feature"]
        feature_list = [feature_dict[k]
                        for k in ("img_feature", "blood_feature", "others_feature")
                        if feature_dict.get(k, None) is not None]

        if self._can_fuse(feature_list):
            # Single pallas_call for concat + all classifier heads; feat never
            # round-trips through HBM between fusion and the classifiers.
            feat, pred_invade, pred_surgery, pred_essential = \
                self.classifier.fused_concat_forward(feature_list, ess_index=0)
        else:
            feature = self.fusion(feature_dict)
            pred_invade, pred_surgery, pred_essential, feat = \
                self.classifier(feature, img_feature)

        return {"preds_invade": pred_invade, "preds_surgery": pred_surgery,
                "preds_essential": pred_essential, "pred_seg": None, "feat": feat}


# --------------------------------------------------------------------------- #
# Demo / self-check
# --------------------------------------------------------------------------- #
if __name__ == "__main__":
    key = jax.random.PRNGKey(0)
    k1, k2, k3, k4, k5, k6, k7 = jax.random.split(key, 7)

    B = 2
    T_IMG = 8
    C_IMG = 512
    C_BLOOD = 64
    C_OTHERS = 64
    NUM_HEADS = 2
    INVADE_CLASSES = 3
    SURGERY_CLASSES = 3
    ESSENTIAL_CLASSES = 2
    CLS_IN = C_IMG + C_BLOOD + C_OTHERS          # 640

    img_pooled = jax.random.normal(k1, (B, 1, C_IMG), dtype=jnp.float32)
    blood_feat = jax.random.normal(k2, (B, 1, C_BLOOD), dtype=jnp.float32)
    others_feat = jax.random.normal(k3, (B, 1, C_OTHERS), dtype=jnp.float32)
    img_tokens = jax.random.normal(k4, (B, T_IMG, C_IMG), dtype=jnp.float32)
    img_ragged = jax.random.normal(k5, (B, 10, 200), dtype=jnp.float32)   # ragged dims

    # ---- full head: fused concat + MHCLS (single pallas_call) ----
    model = Custom_Model_2D(k6, net_fusion="concat", num_heads=NUM_HEADS,
                            classifier_inchannel=CLS_IN,
                            invade_classes=INVADE_CLASSES,
                            surgery_classes=SURGERY_CLASSES,
                            essential_classes=ESSENTIAL_CLASSES,
                            mid_channels=C_IMG)
    feature_dict = {"img_feature": img_pooled, "blood_feature": blood_feat,
                    "others_feature": others_feat}
    out = jax.block_until_ready(model(feature_dict))

    ref_feature = jnp.concatenate([img_pooled, blood_feat, others_feat], axis=2)[:, 0, :]
    assert out["feat"].shape == (B, CLS_IN)
    assert jnp.allclose(out["feat"], ref_feature, atol=1e-6, rtol=1e-6)

    img_sq = img_pooled[:, 0, :]
    for i in range(NUM_HEADS):
        w, b = model.classifier.invade[i]
        ref = ref_feature @ w.T + b
        assert out["preds_invade"][i].shape == (B, INVADE_CLASSES)
        assert jnp.allclose(out["preds_invade"][i], ref, atol=3e-2, rtol=3e-2)

        w, b = model.classifier.surgery[i]
        ref = ref_feature @ w.T + b
        assert out["preds_surgery"][i].shape == (B, SURGERY_CLASSES)
        assert jnp.allclose(out["preds_surgery"][i], ref, atol=3e-2, rtol=3e-2)

        w, b = model.classifier.essential[i]
        ref = img_sq @ w.T + b
        assert out["preds_essential"][i].shape == (B, ESSENTIAL_CLASSES)
        assert jnp.allclose(out["preds_essential"][i], ref, atol=3e-2, rtol=3e-2)

    # ---- 'img' (token-mean) fusion model: non-fused path, 3-D essential input ----
    model_img = Custom_Model_2D(k7, net_fusion="img", num_heads=NUM_HEADS,
                                classifier_inchannel=C_IMG,
                                invade_classes=INVADE_CLASSES,
                                surgery_classes=SURGERY_CLASSES,
                                essential_classes=ESSENTIAL_CLASSES,
                                mid_channels=C_IMG)
    out_img = jax.block_until_ready(model_img({"img_feature": img_tokens}))
    ref_feat_img = jnp.mean(img_tokens, axis=1)
    assert out_img["feat"].shape == (B, C_IMG)
    assert jnp.allclose(out_img["feat"], ref_feat_img, atol=1e-5, rtol=1e-5)
    for i in range(NUM_HEADS):
        w, b = model_img.classifier.invade[i]
        ref = ref_feat_img @ w.T + b
        assert jnp.allclose(out_img["preds_invade"][i], ref, atol=3e-2, rtol=3e-2)
        # torch: squeeze(1) is a no-op for T>1 -> essential heads act per token
        w, b = model_img.classifier.essential[i]
        ref = img_tokens @ w.T + b
        assert out_img["preds_essential"][i].shape == (B, T_IMG, ESSENTIAL_CLASSES)
        assert jnp.allclose(out_img["preds_essential"][i], ref, atol=3e-2, rtol=3e-2)

    # ---- standalone fusion kernels ----
    out_mean = jax.block_until_ready(MMFF("img")({"img_feature": img_tokens}))
    assert jnp.allclose(out_mean, ref_feat_img, atol=1e-5, rtol=1e-5)

    out_rag = jax.block_until_ready(fuse_img_mean(img_ragged))     # ragged T / C, no pad copy
    assert out_rag.shape == (B, 200)
    assert jnp.allclose(out_rag, jnp.mean(img_ragged, axis=1), atol=1e-5, rtol=1e-5)

    out_cat = jax.block_until_ready(
        MMFF("concat")({"img_feature": img_pooled, "blood_feature": blood_feat,
                        "others_feature": others_feat}))
    assert jnp.allclose(out_cat, ref_feature, atol=1e-6, rtol=1e-6)

    # ---- identity branches (pure glue) ----
    assert jnp.array_equal(MMFF("blood")({"blood_feature": blood_feat}), blood_feat)
    assert jnp.array_equal(MMFF("others")({"others_feature": others_feat}), others_feat)

    print("KERNEL_OK")
</pallas_src>

<mosaic_0001>
module attributes {stable_mosaic.version = 11 : i64} {
  func.func @_fused_head_kernel(%arg0: i32, %arg1: memref<2x1x512xf32, #tpu.memory_space<vmem>>, %arg2: memref<2x1x64xf32, #tpu.memory_space<vmem>>, %arg3: memref<2x1x64xf32, #tpu.memory_space<vmem>>, %arg4: memref<640x128xf32, #tpu.memory_space<vmem>>, %arg5: memref<1x128xf32, #tpu.memory_space<vmem>>, %arg6: memref<512x128xf32, #tpu.memory_space<vmem>>, %arg7: memref<1x128xf32, #tpu.memory_space<vmem>>, %arg8: memref<2x640xf32, #tpu.memory_space<vmem>>, %arg9: memref<2x128xf32, #tpu.memory_space<vmem>>, %arg10: memref<2x128xf32, #tpu.memory_space<vmem>>) attributes {dimension_semantics = [#tpu.dimension_semantics<parallel>], iteration_bounds = array<i64: 1>, scalar_prefetch = 0 : i64, scratch_operands = 0 : i64, tpu.core_type = #tpu.core_type<tc>, window_params = [{transform_indices = @transform_0, window_bounds = array<i64: 2, 1, 512>}, {transform_indices = @transform_1, window_bounds = array<i64: 2, 1, 64>}, {transform_indices = @transform_2, window_bounds = array<i64: 2, 1, 64>}, {pipeline_mode = #tpu.pipeline_mode<synchronous>, transform_indices = @transform_3, window_bounds = array<i64: 640, 128>}, {pipeline_mode = #tpu.pipeline_mode<synchronous>, transform_indices = @transform_4, window_bounds = array<i64: 1, 128>}, {pipeline_mode = #tpu.pipeline_mode<synchronous>, transform_indices = @transform_5, window_bounds = array<i64: 512, 128>}, {pipeline_mode = #tpu.pipeline_mode<synchronous>, transform_indices = @transform_6, window_bounds = array<i64: 1, 128>}, {transform_indices = @transform_7, window_bounds = array<i64: 2, 640>}, {transform_indices = @transform_8, window_bounds = array<i64: 2, 128>}, {transform_indices = @transform_9, window_bounds = array<i64: 2, 128>}]} {
    %c0 = arith.constant 0 : index
    %c0_0 = arith.constant 0 : index
    %c0_1 = arith.constant 0 : index
    %0 = vector.load %arg1[%c0, %c0_0, %c0_1] : memref<2x1x512xf32, #tpu.memory_space<vmem>>, vector<2x1x512xf32>
    %1 = vector.shape_cast %0 : vector<2x1x512xf32> to vector<2x512xf32>
    %c0_2 = arith.constant 0 : index
    %c0_3 = arith.constant 0 : index
    %c0_4 = arith.constant 0 : index
    %2 = vector.load %arg2[%c0_2, %c0_3, %c0_4] : memref<2x1x64xf32, #tpu.memory_space<vmem>>, vector<2x1x64xf32>
    %3 = vector.shape_cast %2 : vector<2x1x64xf32> to vector<2x64xf32>
    %c0_5 = arith.constant 0 : index
    %c0_6 = arith.constant 0 : index
    %c0_7 = arith.constant 0 : index
    %4 = vector.load %arg3[%c0_5, %c0_6, %c0_7] : memref<2x1x64xf32, #tpu.memory_space<vmem>>, vector<2x1x64xf32>
    %5 = vector.shape_cast %4 : vector<2x1x64xf32> to vector<2x64xf32>
    %c0_8 = arith.constant 0 : index
    %c0_9 = arith.constant 0 : index
    %6 = vector.load %arg8[%c0_8, %c0_9] : memref<2x640xf32, #tpu.memory_space<vmem>>, vector<2x512xf32>
    tpu.vector_store %arg8[%c0_8, %c0_9], %1 {strides = array<i32>} : memref<2x640xf32, #tpu.memory_space<vmem>>, vector<2x512xf32>,
    %7 = tpu.concatenate %3, %5 in 1 : vector<2x64xf32>, vector<2x64xf32> -> vector<2x128xf32>
    %c0_10 = arith.constant 0 : index
    %c512 = arith.constant 512 : index
    %8 = vector.load %arg8[%c0_10, %c512] : memref<2x640xf32, #tpu.memory_space<vmem>>, vector<2x128xf32>
    tpu.vector_store %arg8[%c0_10, %c512], %7 {strides = array<i32>} : memref<2x640xf32, #tpu.memory_space<vmem>>, vector<2x128xf32>,
    %cst = arith.constant 0.000000e+00 : f32
    %9 = vector.broadcast %cst : f32 to vector<2x128xf32>
    %c0_11 = arith.constant 0 : index
    %c0_12 = arith.constant 0 : index
    %10 = vector.load %arg4[%c0_11, %c0_12] : memref<640x128xf32, #tpu.memory_space<vmem>>, vector<512x128xf32>
    %cst_13 = arith.constant dense<0.000000e+00> : vector<2x128xf32>
    %11 = tpu.matmul %1, %10, %cst_13 {dimension_numbers = #tpu.dot_dimension_numbers<[1], [0], [0], [1], [0, 0, 1, 1], [], []>} : vector<2x512xf32>, vector<512x128xf32>, vector<2x128xf32> -> vector<2x128xf32>
    %12 = arith.addf %9, %11 : vector<2x128xf32>
    %c512_14 = arith.constant 512 : index
    %c0_15 = arith.constant 0 : index
    %13 = vector.load %arg4[%c512_14, %c0_15] : memref<640x128xf32, #tpu.memory_space<vmem>>, vector<64x128xf32>
    %cst_16 = arith.constant dense<0.000000e+00> : vector<2x128xf32>
    %14 = tpu.matmul %3, %13, %cst_16 {dimension_numbers = #tpu.dot_dimension_numbers<[1], [0], [0], [1], [0, 0, 1, 1], [], []>} : vector<2x64xf32>, vector<64x128xf32>, vector<2x128xf32> -> vector<2x128xf32>
    %15 = arith.addf %12, %14 : vector<2x128xf32>
    %c576 = arith.constant 576 : index
    %c0_17 = arith.constant 0 : index
    %16 = vector.load %arg4[%c576, %c0_17] : memref<640x128xf32, #tpu.memory_space<vmem>>, vector<64x128xf32>
    %cst_18 = arith.constant dense<0.000000e+00> : vector<2x128xf32>
    %17 = tpu.matmul %5, %16, %cst_18 {dimension_numbers = #tpu.dot_dimension_numbers<[1], [0], [0], [1], [0, 0, 1, 1], [], []>} : vector<2x64xf32>, vector<64x128xf32>, vector<2x128xf32> -> vector<2x128xf32>
    %18 = arith.addf %15, %17 : vector<2x128xf32>
    %c0_19 = arith.constant 0 : index
    %c0_20 = arith.constant 0 : index
    %19 = vector.load %arg5[%c0_19, %c0_20] : memref<1x128xf32, #tpu.memory_space<vmem>>, vector<1x128xf32>
    %20 = vector.broadcast %19 : vector<1x128xf32> to vector<2x128xf32>
    %21 = arith.addf %18, %20 : vector<2x128xf32>
    %c0_21 = arith.constant 0 : index
    %c0_22 = arith.constant 0 : index
    %22 = vector.load %arg9[%c0_21, %c0_22] : memref<2x128xf32, #tpu.memory_space<vmem>>, vector<2x128xf32>
    tpu.vector_store %arg9[%c0_21, %c0_22], %21 {strides = array<i32>} : memref<2x128xf32, #tpu.memory_space<vmem>>, vector<2x128xf32>,
    %c0_23 = arith.constant 0 : index
    %c0_24 = arith.constant 0 : index
    %23 = vector.load %arg6[%c0_23, %c0_24] : memref<512x128xf32, #tpu.memory_space<vmem>>, vector<512x128xf32>
    %cst_25 = arith.constant dense<0.000000e+00> : vector<2x128xf32>
    %24 = tpu.matmul %1, %23, %cst_25 {dimension_numbers = #tpu.dot_dimension_numbers<[1], [0], [0], [1], [0, 0, 1, 1], [], []>} : vector<2x512xf32>, vector<512x128xf32>, vector<2x128xf32> -> vector<2x128xf32>
    %c0_26 = arith.constant 0 : index
    %c0_27 = arith.constant 0 : index
    %25 = vector.load %arg7[%c0_26, %c0_27] : memref<1x128xf32, #tpu.memory_space<vmem>>, vector<1x128xf32>
    %26 = vector.broadcast %25 : vector<1x128xf32> to vector<2x128xf32>
    %27 = arith.addf %24, %26 : vector<2x128xf32>
    %c0_28 = arith.constant 0 : index
    %c0_29 = arith.constant 0 : index
    %28 = vector.load %arg10[%c0_28, %c0_29] : memref<2x128xf32, #tpu.memory_space<vmem>>, vector<2x128xf32>
    tpu.vector_store %arg10[%c0_28, %c0_29], %27 {strides = array<i32>} : memref<2x128xf32, #tpu.memory_space<vmem>>, vector<2x128xf32>,
    return
  }
  func.func @transform_0(%arg0: i32) -> (i32, i32, i32) {
    %c0_i32 = arith.constant 0 : i32
    %c0_i32_0 = arith.constant 0 : i32
    %c0_i32_1 = arith.constant 0 : i32
    return %arg0, %c0_i32, %c0_i32_0 : i32, i32, i32
  }
  func.func @transform_1(%arg0: i32) -> (i32, i32, i32) {
    %c0_i32 = arith.constant 0 : i32
    %c0_i32_0 = arith.constant 0 : i32
    %c0_i32_1 = arith.constant 0 : i32
    return %arg0, %c0_i32, %c0_i32_0 : i32, i32, i32
  }
  func.func @transform_2(%arg0: i32) -> (i32, i32, i32) {
    %c0_i32 = arith.constant 0 : i32
    %c0_i32_0 = arith.constant 0 : i32
    %c0_i32_1 = arith.constant 0 : i32
    return %arg0, %c0_i32, %c0_i32_0 : i32, i32, i32
  }
  func.func @transform_3(%arg0: i32) -> (i32, i32) {
    %c0_i32 = arith.constant 0 : i32
    %c0_i32_0 = arith.constant 0 : i32
    %c0_i32_1 = arith.constant 0 : i32
    return %c0_i32, %c0_i32_0 : i32, i32
  }
  func.func @transform_4(%arg0: i32) -> (i32, i32) {
    %c0_i32 = arith.constant 0 : i32
    %c0_i32_0 = arith.constant 0 : i32
    %c0_i32_1 = arith.constant 0 : i32
    return %c0_i32, %c0_i32_0 : i32, i32
  }
  func.func @transform_5(%arg0: i32) -> (i32, i32) {
    %c0_i32 = arith.constant 0 : i32
    %c0_i32_0 = arith.constant 0 : i32
    %c0_i32_1 = arith.constant 0 : i32
    return %c0_i32, %c0_i32_0 : i32, i32
  }
  func.func @transform_6(%arg0: i32) -> (i32, i32) {
    %c0_i32 = arith.constant 0 : i32
    %c0_i32_0 = arith.constant 0 : i32
    %c0_i32_1 = arith.constant 0 : i32
    return %c0_i32, %c0_i32_0 : i32, i32
  }
  func.func @transform_7(%arg0: i32) -> (i32, i32) {
    %c0_i32 = arith.constant 0 : i32
    %c0_i32_0 = arith.constant 0 : i32
    return %arg0, %c0_i32 : i32, i32
  }
  func.func @transform_8(%arg0: i32) -> (i32, i32) {
    %c0_i32 = arith.constant 0 : i32
    %c0_i32_0 = arith.constant 0 : i32
    return %arg0, %c0_i32 : i32, i32
  }
  func.func @transform_9(%arg0: i32) -> (i32, i32) {
    %c0_i32 = arith.constant 0 : i32
    %c0_i32_0 = arith.constant 0 : i32
    return %arg0, %c0_i32 : i32, i32
  }
}

</mosaic_0001>

<bundles_post_ra>
// kernel: tpu_custom_call.1
= control target key start
LH: loop header
LB: loop body
LE: loop exit
PB: predicated region body
PF: predicated region fallthrough
CT: control target
= control target key end

     0   :  { %15 = vsyncpa [#allocation3], 0  ;;  %s1507_s0 = inlined_call_operand.hbm [shape: f32[2,1,512], index: 0, kind: input, shape index: {}]   ;;  %s1508_s1 = inlined_call_operand.vmem [shape: f32[2,1,64], index: 1, kind: input, shape index: {}]   ;;  %s1509_s2 = inlined_call_operand.vmem [shape: f32[2,1,64], index: 2, kind: input, shape index: {}]   ;;  %s1510_s3 = inlined_call_operand.hbm [shape: f32[640,128], index: 3, kind: input, shape index: {}]   ;;  %s1511_s4 = inlined_call_operand.vmem [shape: f32[1,128], index: 4, kind: input, shape index: {}]   ;;  %s1512_s5 = inlined_call_operand.hbm [shape: f32[512,128], index: 5, kind: input, shape index: {}]   ;;  %s1513_s6 = inlined_call_operand.vmem [shape: f32[1,128], index: 6, kind: input, shape index: {}]   ;;  %s1514_s7 = inlined_call_operand.hbm [shape: f32[2,640], index: 7, kind: output, shape index: {0}]   ;;  %s1515_s8 = inlined_call_operand.hbm [shape: f32[2,128], index: 8, kind: output, shape index: {1}]   ;;  %s1516_s9 = inlined_call_operand.hbm [shape: f32[2,128], index: 9, kind: output, shape index: {2}]  }
   0x1   :  { %16 = vsyncpa [#allocation6], 0 }
   0x2   :  { %17 = vsyncpa [#allocation4], 0 }
   0x3   :  { %18 = vsyncpa [#allocation10], 0  ;;  %s1296_s30 = smov [#allocation5]   ;;  %s1156_s13 = scalar_lea.hbm %s1510_s3, 10240 }
   0x4   :  { %s40_s10 = sshll.u32 %s1296_s30, 4  ;;  %p1157_p0 = scmp.ne.s32.totalorder %s1510_s3, %s1156_s13  ;;  %s41_s10 = int_to_ptr.vmem [resolvable:$true] %s40_s10 }
   0x5   :  { %p1160_p1 = scmp.lt.u32.totalorder %s1156_s13, %s1510_s3 }
   0x7   :  { %p1162_p2 = pnand %p1160_p1, %p1157_p0 }
   0x9   :  { %1165 = shalt.err (!%p1162_p2)
}
   0xa   :  { %s1166_s18 = scalar_lea.vmem %s41_s10, 10240  ;;  %p1171_p4 = scmp.lt.s32.totalorder %s41_s10, %s41_s10 }
   0xb   :  { %p1167_p3 = scmp.ne.s32.totalorder %s41_s10, %s1166_s18  ;;  %p1172_p5 = scmp.lt.s32.totalorder %s1166_s18, %s1166_s18 }
   0xd   :  { %p1173_p6 = por %p1172_p5, %p1171_p4 }
   0xf   :  { %p1174_p7 = pnand %p1173_p6, %p1167_p3 }
  0x11   :  { %1177 = shalt.err (!%p1174_p7)
}
  0x12   :  { %s1297_s19 = smov 128   ;;  %s1298_s20 = smov 8  }
  0x13   :  { %46 = dma.hbm_to_vmem [thread:$0]  %s1510_s3, 10240, %s41_s10, [#allocation6], %s1297_s19, %s1297_s19, %s1298_s20  }
  0x14   :  { %s1299_s23 = smov [#allocation2]   ;;  %s1178_s27 = scalar_lea.hbm %s1507_s0, 128 }
  0x15   :  { %s24_s24 = sshll.u32 %s1299_s23, 4  ;;  %p1179_p8 = scmp.ne.s32.totalorder %s1507_s0, %s1178_s27  ;;  %s25_s24 = int_to_ptr.vmem [resolvable:$true] %s24_s24 }
  0x16   :  { %p1182_p9 = scmp.lt.u32.totalorder %s1178_s27, %s1507_s0 }
  0x18   :  { %p1184_p10 = pnand %p1182_p9, %p1179_p8 }
  0x1a   :  { %1187 = shalt.err (!%p1184_p10)
}
  0x1b   :  { %s1188_s12 = scalar_lea.vmem %s25_s24, 128  ;;  %p1193_p12 = scmp.lt.s32.totalorder %s25_s24, %s25_s24 }
  0x1c   :  { %p1189_p11 = scmp.ne.s32.totalorder %s25_s24, %s1188_s12  ;;  %p1194_p13 = scmp.lt.s32.totalorder %s1188_s12, %s1188_s12 }
  0x1e   :  { %p1195_p0 = por %p1194_p13, %p1193_p12 }
  0x20   :  { %p1196_p1 = pnand %p1195_p0, %p1189_p11 }
  0x22   :  { %1199 = shalt.err (!%p1196_p1)
}
  0x23   :  { %s1300_s3 = smov 64   ;;  %s1301_s10 = smov 4  }
  0x24   :  { %30 = dma.hbm_to_vmem [thread:$0]  %s1507_s0, 128, %s25_s24, [#allocation3], %s1300_s3, %s1300_s3, %s1301_s10  }
  0x25   :  { %s1302_s15 = smov [#allocation7]   ;;  %s1200_s21 = scalar_lea.hbm %s1512_s5, 8192 }
  0x26   :  { %s54_s16 = sshll.u32 %s1302_s15, 4  ;;  %p1201_p2 = scmp.ne.s32.totalorder %s1512_s5, %s1200_s21  ;;  %s55_s16 = int_to_ptr.vmem [resolvable:$true] %s54_s16 }
  0x27   :  { %p1204_p3 = scmp.lt.u32.totalorder %s1200_s21, %s1512_s5 }
  0x29   :  { %p1206_p4 = pnand %p1204_p3, %p1201_p2 }
  0x2b   :  { %1209 = shalt.err (!%p1206_p4)
}
  0x2c   :  { %s1210_s27 = scalar_lea.vmem %s55_s16, 8192  ;;  %p1215_p6 = scmp.lt.s32.totalorder %s55_s16, %s55_s16 }
  0x2d   :  { %p1211_p5 = scmp.ne.s32.totalorder %s55_s16, %s1210_s27  ;;  %p1216_p7 = scmp.lt.s32.totalorder %s1210_s27, %s1210_s27 }
  0x2f   :  { %p1217_p8 = por %p1216_p7, %p1215_p6 }
  0x31   :  { %p1218_p9 = pnand %p1217_p8, %p1211_p5 }
  0x33   :  { %1221 = shalt.err (!%p1218_p9)
}
  0x34   :  { %60 = dma.hbm_to_vmem [thread:$0]  %s1512_s5, 8192, %s55_s16, [#allocation6], %s1297_s19, %s1297_s19, %s1298_s20  }
  0x35   :  { %1288 = dma.done.wait [#allocation3], 128  }
  0x36   :  { %1289 = vsyncadd [#allocation3], 4294967168 }
  0x37   :  { %1290 = dma.done.wait [#allocation6], 18432  }
  0x38   :  { %1291 = vsyncadd [#allocation6], 4294948864  ;;  %v1303_v0 = vmov 0.0|0.0   ;;  %vm1304_vm0 = vmmov 0   ;;  %v1305_v1 = vmov 0.0   ;;  %v96_v4 = vlaneseq  ;;  %v195_v5 = vld [vmem:[#allocation5 + $0x200] sm:$0xff] }
  0x39   :  { %989 = vmatprep.subr.bf16.mxu0 %v1303_v0  ;;  %967 = vmatprep.mubr.msk.f32.mxu0 %vm1304_vm0, %v1305_v1  ;;  %v1306_v2 = vmov 1966171168   ;;  %v196_v6 = vld [vmem:[#allocation5 + $0x208] sm:$0xff]  ;;  %v147_v7 = vld [vmem:[#allocation5 + $0x80] sm:$0xff]  ;;  %v197_v14 = vld [vmem:[#allocation5 + $0x210] sm:$0xff]  ;;  %vm128_vm1 = vcmask 523264  }
  0x3a   :  { %v94_v3 = vunpack.c.l.s4 %v1306_v2  ;;  %v990_v8 = vpack.c.bf16 %v196_v6, %v195_v5  ;;  %v148_v9 = vld [vmem:[#allocation5 + $0x88] sm:$0xff]  ;;  %v131_v10 = vld [vmem:[#allocation5] sm:$0xff]  ;;  %v198_v15 = vld [vmem:[#allocation5 + $0x218] sm:$0xff]  ;;  %v97_v22 = vshrl.u32 %v96_v4, 7 }
  0x3b   :  { %v132_v11 = vld [vmem:[#allocation5 + $0x8] sm:$0xff]  ;;  %v1001_v12 = vpack.c.bf16 %v148_v9, %v147_v7  ;;  %v149_v16 = vld [vmem:[#allocation5 + $0x90] sm:$0xff]  ;;  %v993_v17 = vpack.c.bf16 %v198_v15, %v197_v14  ;;  %v150_v18 = vld [vmem:[#allocation5 + $0x98] sm:$0xff] }
  0x3c   :  { %v1003_v13 = vpack.c.bf16 %v132_v11, %v131_v10  ;;  %991 = vmatpush3.bf16.msra.mxu0 %v990_v8  ;;  %v133_v19 = vld [vmem:[#allocation5 + $0x10] sm:$0xff]  ;;  %v134_v20 = vld [vmem:[#allocation5 + $0x18] sm:$0xff]  ;;  %v95_v21 = vunpack.c.0.s8 %v94_v3  ;;  %v1005_v23 = vpack.c.bf16 %v150_v18, %v149_v16  ;;  %v199_v24 = vld [vmem:[#allocation5 + $0x220] sm:$0xff] }
  0x3d   :  { %1002 = vmatprep.subr.bf16.mxu1 %v1001_v12  ;;  %992 = vmatprep.subr.bf16.mxu0 %v1303_v0  ;;  %v200_v25 = vld [vmem:[#allocation5 + $0x228] sm:$0xff]  ;;  %v151_v26 = vld [vmem:[#allocation5 + $0xa0] sm:$0xff]  ;;  %v1007_v27 = vpack.c.bf16 %v134_v20, %v133_v19  ;;  %v201_v33 = vld [vmem:[#allocation5 + $0x230] sm:$0xff] }
  0x3e   :  { %1004 = vmatpush3.bf16.msra.mxu1 %v1003_v13  ;;  %v152_v28 = vld [vmem:[#allocation5 + $0xa8] sm:$0xff]  ;;  %v135_v30 = vld [vmem:[#allocation5 + $0x20] sm:$0xff]  ;;  %v996_v32 = vpack.c.bf16 %v200_v25, %v199_v24  ;;  %v153_v34 = vld [vmem:[#allocation5 + $0xb0] sm:$0xff]  ;;  %v1408_v36 = vsub.s32 %v95_v21, %v97_v22 }
  0x3f   :  { %1006 = vmatprep.subr.bf16.mxu1 %v1005_v23  ;;  %v1009_v29 = vpack.c.bf16 %v152_v28, %v151_v26  ;;  %v136_v31 = vld [vmem:[#allocation5 + $0x28] sm:$0xff]  ;;  %v154_v35 = vld [vmem:[#allocation5 + $0xb8] sm:$0xff]  ;;  %v179_v42 = vld [vmem:[#allocation5 + $0x180] sm:$0xff] }
  0x40   :  { %994 = vmatpush3.bf16.msra.mxu0 %v993_v17  ;;  %v202_v37 = vld [vmem:[#allocation5 + $0x238] sm:$0xff]  ;;  %v1011_v40 = vpack.c.bf16 %v136_v31, %v135_v30  ;;  %v180_v43 = vld [vmem:[#allocation5 + $0x188] sm:$0xff]  ;;  %v1013_v44 = vpack.c.bf16 %v154_v35, %v153_v34  ;;  %v137_v45 = vld [vmem:[#allocation5 + $0x30] sm:$0xff] }
  0x41   :  { %995 = vmatprep.subr.bf16.mxu0 %v1303_v0  ;;  %v74_v38 = vld [vmem:[%s1508_s1] sm:$0x1]  ;;  %v75_v39 = vld [vmem:[%s1508_s1 + $0x1] sm:$0x1]  ;;  %v999_v47 = vpack.c.bf16 %v202_v37, %v201_v33  ;;  %v155_v49 = vld [vmem:[#allocation5 + $0xc0] sm:$0xff]  ;;  %v1033_v51 = vpack.c.bf16 %v180_v43, %v179_v42 }
  0x42   :  { %1008 = vmatpush3.bf16.msra.mxu1 %v1007_v27  ;;  %v92_v41 = vcombine.low %v74_v38, %v75_v39  ;;  %v138_v46 = vld [vmem:[#allocation5 + $0x38] sm:$0xff]  ;;  %v156_v50 = vld [vmem:[#allocation5 + $0xc8] sm:$0xff]  ;;  %v163_v52 = vld [vmem:[#allocation5 + $0x100] sm:$0xff] }
  0x43   :  { %1010 = vmatprep.subr.bf16.mxu1 %v1009_v29  ;;  %v164_v53 = vld [vmem:[#allocation5 + $0x108] sm:$0xff]  ;;  %v1015_v54 = vpack.c.bf16 %v138_v46, %v137_v45  ;;  %v181_v55 = vld [vmem:[#allocation5 + $0x190] sm:$0xff]  ;;  %v182_v56 = vld [vmem:[#allocation5 + $0x198] sm:$0xff]  ;;  %v1017_v58 = vpack.c.bf16 %v156_v50, %v155_v49 }
  0x44   :  { %997 = vmatpush3.bf16.msra.mxu0 %v996_v32  ;;  %v99_v48 = vrot.slane %v92_v41, %v1408_v36  ;;  %v139_v59 = vld [vmem:[#allocation5 + $0x40] sm:$0xff]  ;;  %v140_v60 = vld [vmem:[#allocation5 + $0x48] sm:$0xff]  ;;  %v1035_v61 = vpack.c.bf16 %v164_v53, %v163_v52  ;;  %v157_v62 = vld [vmem:[#allocation5 + $0xd0] sm:$0xff]  ;;  %v1037_v2 = vpack.c.bf16 %v182_v56, %v181_v55 }
  0x45   :  { %998 = vmatprep.subr.bf16.mxu0 %v1303_v0  ;;  %v158_v63 = vld [vmem:[#allocation5 + $0xd8] sm:$0xff]  ;;  %v165_v3 = vld [vmem:[#allocation5 + $0x110] sm:$0xff]  ;;  %v1019_v5 = vpack.c.bf16 %v140_v60, %v139_v59  ;;  %v183_v6 = vld [vmem:[#allocation5 + $0x1a0] sm:$0xff] }
  0x46   :  { %1012 = vmatpush3.bf16.msra.mxu1 %v1011_v40  ;;  %v1420_v57 = vrot.slane %v99_v48, %v1408_v36  ;;  %v166_v4 = vld [vmem:[#allocation5 + $0x118] sm:$0xff]  ;;  %v184_v7 = vld [vmem:[#allocation5 + $0x1a8] sm:$0xff]  ;;  %v1021_v8 = vpack.c.bf16 %v158_v63, %v157_v62  ;;  %v141_v9 = vld [vmem:[#allocation5 + $0x50] sm:$0xff] }
  0x47   :  { %1014 = vmatprep.subr.bf16.mxu1 %v1013_v44  ;;  %v142_v10 = vld [vmem:[#allocation5 + $0x58] sm:$0xff]  ;;  %v159_v11 = vld [vmem:[#allocation5 + $0xe0] sm:$0xff]  ;;  %v1039_v12 = vpack.c.bf16 %v166_v4, %v165_v3  ;;  %v160_v13 = vld [vmem:[#allocation5 + $0xe8] sm:$0xff]  ;;  %v1041_v14 = vpack.c.bf16 %v184_v7, %v183_v6 }
  0x48   :  { %1000 = vmatpush3.bf16.msra.mxu0 %v999_v47  ;;  %v167_v15 = vld [vmem:[#allocation5 + $0x120] sm:$0xff]  ;;  %v168_v16 = vld [vmem:[#allocation5 + $0x128] sm:$0xff]  ;;  %v1155_v17 = vld [vmem:[#allocation2] sm:$0xff]   ;;  %v1023_v18 = vpack.c.bf16 %v142_v10, %v141_v9  ;;  %v1025_v21 = vpack.c.bf16 %v160_v13, %v159_v11 }
  0x49   :  { %1034 = vmatprep.subr.bf16.mxu0 %v1033_v51  ;;  %v185_v19 = vld [vmem:[#allocation5 + $0x1b0] sm:$0xff]  ;;  %v186_v20 = vld [vmem:[#allocation5 + $0x1b8] sm:$0xff]  ;;  %v143_v22 = vld [vmem:[#allocation5 + $0x60] sm:$0xff]  ;;  %v281_v24 = vrot.slane %v1155_v17, %v1408_v36  ;;  %788 = vst.sshfl [vmem:[#allocation8] sm:$0xff pattern:$0x75316420] %v1155_v17  ;;  %v1043_v25 = vpack.c.bf16 %v168_v16, %v167_v15 }
  0x4a   :  { %1016 = vmatpush3.bf16.msra.mxu1 %v1015_v54  ;;  %v144_v23 = vld [vmem:[#allocation5 + $0x68] sm:$0xff]  ;;  %v161_v26 = vld [vmem:[#allocation5 + $0xf0] sm:$0xff]  ;;  %v162_v27 = vld [vmem:[#allocation5 + $0xf8] sm:$0xff]  ;;  %v1045_v28 = vpack.c.bf16 %v186_v20, %v185_v19 }
  0x4b   :  { %968 = vmatmul.mubr.msk.f32.vlgmr.msra.gmra.mrb[0].mxu0 %vm128_vm1, %v1420_v57  ;;  %1018 = vmatprep.subr.bf16.mxu1 %v1017_v58  ;;  %v169_v29 = vld [vmem:[#allocation5 + $0x130] sm:$0xff]  ;;  %v170_v30 = vld [vmem:[#allocation5 + $0x138] sm:$0xff]  ;;  %v282_v31 = vcombine.high %v281_v24, %v281_v24  ;;  %v1027_v32 = vpack.c.bf16 %v144_v23, %v143_v22  ;;  %v187_v33 = vld [vmem:[#allocation5 + $0x1c0] sm:$0xff]  ;;  %v1029_v35 = vpack.c.bf16 %v162_v27, %v161_v26 }
  0x4c   :  { %1036 = vmatpush3.bf16.msra.mxu0 %v1035_v61  ;;  %v188_v34 = vld [vmem:[#allocation5 + $0x1c8] sm:$0xff]  ;;  %v145_v37 = vld [vmem:[#allocation5 + $0x70] sm:$0xff]  ;;  %v146_v38 = vld [vmem:[#allocation5 + $0x78] sm:$0xff]  ;;  %v1047_v40 = vpack.c.bf16 %v170_v30, %v169_v29  ;;  %v1441_v54 = vrot.slane %v281_v24, %v1408_v36 }
  0x4d   :  { %1038 = vmatprep.subr.bf16.mxu0 %v1037_v2  ;;  %v1426_v39 = vrot.slane %v282_v31, %v1408_v36  ;;  %v1049_v41 = vpack.c.bf16 %v188_v34, %v187_v33  ;;  %v171_v42 = vld [vmem:[#allocation5 + $0x140] sm:$0xff]  ;;  %v172_v43 = vld [vmem:[#allocation5 + $0x148] sm:$0xff]  ;;  %v1031_v45 = vpack.c.bf16 %v146_v38, %v145_v37  ;;  %v189_v47 = vld [vmem:[#allocation5 + $0x1d0] sm:$0xff] }
  0x4e   :  { %1020 = vmatpush3.bf16.msra.mxu1 %v1019_v5  ;;  %v443_v46 = vld [vmem:[#allocation5 + $0x240] sm:$0xff]  ;;  %v190_v48 = vld [vmem:[#allocation5 + $0x1d8] sm:$0xff]  ;;  %v444_v49 = vld [vmem:[#allocation5 + $0x248] sm:$0xff]  ;;  %v1051_v52 = vpack.c.bf16 %v172_v43, %v171_v42  ;;  %v1455_v29 = vcombine.high %v1441_v54, %v1441_v54 }
  0x4f   :  { %1022 = vmatprep.subr.bf16.mxu1 %v1021_v8  ;;  %367 = vmatprep.mubr.f32.mxu1 %v1426_v39  ;;  %v1431_v44 = vcombine.high %v1426_v39, %v1426_v39  ;;  %v76_v50 = vld [vmem:[%s1509_s2] sm:$0x1]  ;;  %v77_v51 = vld [vmem:[%s1509_s2 + $0x1] sm:$0x1]  ;;  %v1053_v55 = vpack.c.bf16 %v190_v48, %v189_v47  ;;  %v173_v56 = vld [vmem:[#allocation5 + $0x150] sm:$0xff]  ;;  %v1066_v59 = vpack.c.bf16 %v444_v49, %v443_v46  ;;  %s1307_s2 = smov [#allocation8]  }
  0x50   :  { %1040 = vmatpush3.bf16.msra.mxu0 %v1039_v12  ;;  %v110_v53 = vcombine.low %v76_v50, %v77_v51  ;;  %v174_v58 = vld [vmem:[#allocation5 + $0x158] sm:$0xff]  ;;  %v191_v60 = vld [vmem:[#allocation5 + $0x1e0] sm:$0xff]  ;;  %v192_v61 = vld [vmem:[#allocation5 + $0x1e8] sm:$0xff]  ;;  %s751_s12 = sshll.u32 %s1307_s2, 4  ;;  %s752_s12 = int_to_ptr.vmem [resolvable:$true] %s751_s12 }
  0x51   :  { %1042 = vmatprep.subr.bf16.mxu0 %v1041_v14  ;;  %437 = vmatprep.mubr.f32.mxu0 %v1431_v44  ;;  %v445_v63 = vld [vmem:[#allocation5 + $0x250] sm:$0xff]  ;;  %v446_v2 = vld [vmem:[#allocation5 + $0x258] sm:$0xff]  ;;  %v1055_v3 = vpack.c.bf16 %v174_v58, %v173_v56  ;;  %v1057_v4 = vpack.c.bf16 %v192_v61, %v191_v60  ;;  %v175_v5 = vld [vmem:[#allocation5 + $0x160] sm:$0xff]  ;;  %p1227_p11 = scmp.lt.s32.totalorder %s752_s12, %s752_s12 }
  0x52   :  { %1024 = vmatpush3.bf16.msra.mxu1 %v1023_v18  ;;  %v117_v62 = vrot.slane %v110_v53, %v1408_v36  ;;  %v176_v6 = vld [vmem:[#allocation5 + $0x168] sm:$0xff]  ;;  %v1069_v8 = vpack.c.bf16 %v446_v2, %v445_v63  ;;  %v193_v9 = vld [vmem:[#allocation5 + $0x1f0] sm:$0xff]  ;;  %v194_v10 = vld [vmem:[#allocation5 + $0x1f8] sm:$0xff] }
  0x53   :  { %1026 = vmatprep.subr.bf16.mxu1 %v1025_v21  ;;  %v447_v11 = vld [vmem:[#allocation5 + $0x260] sm:$0xff]  ;;  %v448_v12 = vld [vmem:[#allocation5 + $0x268] sm:$0xff]  ;;  %v1059_v13 = vpack.c.bf16 %v176_v6, %v175_v5  ;;  %v1061_v14 = vpack.c.bf16 %v194_v10, %v193_v9  ;;  %v177_v15 = vld [vmem:[#allocation5 + $0x170] sm:$0xff] }
  0x54   :  { %1044 = vmatpush3.bf16.msra.mxu0 %v1043_v25  ;;  %v124_v7 = vrot.slane %v117_v62, %v1408_v36  ;;  %v178_v16 = vld [vmem:[#allocation5 + $0x178] sm:$0xff]  ;;  %v1072_v36 = vpack.c.bf16 %v448_v12, %v447_v11  ;;  %v549_v17 = vld [vmem:[#allocation7 + $0x80] sm:$0xff]  ;;  %v550_v18 = vld [vmem:[#allocation7 + $0x88] sm:$0xff] }
  0x55   :  { %1046 = vmatprep.subr.bf16.mxu0 %v1045_v28  ;;  %v449_v19 = vld [vmem:[#allocation5 + $0x270] sm:$0xff]  ;;  %v1063_v20 = vpack.c.bf16 %v178_v16, %v177_v15  ;;  %v581_v21 = vld [vmem:[#allocation7 + $0x180] sm:$0xff]  ;;  %v582_v22 = vld [vmem:[#allocation7 + $0x188] sm:$0xff]  ;;  %v1077_v23 = vpack.c.bf16 %v550_v18, %v549_v17 }
  0x56   :  { %1028 = vmatpush3.bf16.msra.mxu1 %v1027_v32  ;;  %125 = vrot.lane.b32.xlu0 %v124_v7, %s1300_s3  ;;  %v533_v24 = vld [vmem:[#allocation7] sm:$0xff]  ;;  %v534_v25 = vld [vmem:[#allocation7 + $0x8] sm:$0xff]  ;;  %v551_v27 = vld [vmem:[#allocation7 + $0x90] sm:$0xff]  ;;  %v1109_v30 = vpack.c.bf16 %v582_v22, %v581_v21  ;;  %s1222_s3 = scalar_lea.vmem %s752_s12, 160 }
  0x57   :  { %1030 = vmatprep.subr.bf16.mxu1 %v1029_v35  ;;  %v552_v28 = vld [vmem:[#allocation7 + $0x98] sm:$0xff]  ;;  %v565_v31 = vld [vmem:[#allocation7 + $0x100] sm:$0xff]  ;;  %v566_v32 = vld [vmem:[#allocation7 + $0x108] sm:$0xff]  ;;  %v1079_v33 = vpack.c.bf16 %v534_v25, %v533_v24  ;;  %p1223_p10 = scmp.ne.s32.totalorder %s752_s12, %s1222_s3  ;;  %p1228_p12 = scmp.lt.s32.totalorder %s1222_s3, %s1222_s3 }
  0x58   :  { %1048 = vmatpush3.bf16.msra.mxu0 %v1047_v40  ;;  %v583_v34 = vld [vmem:[#allocation7 + $0x190] sm:$0xff]  ;;  %v584_v35 = vld [vmem:[#allocation7 + $0x198] sm:$0xff]  ;;  %v1081_v37 = vpack.c.bf16 %v552_v28, %v551_v27  ;;  %v553_v42 = vld [vmem:[#allocation7 + $0xa0] sm:$0xff] }
  0x59   :  { %1050 = vmatprep.subr.bf16.mxu0 %v1049_v41  ;;  %v535_v38 = vld [vmem:[#allocation7 + $0x10] sm:$0xff]  ;;  %v536_v40 = vld [vmem:[#allocation7 + $0x18] sm:$0xff]  ;;  %v1111_v41 = vpack.c.bf16 %v566_v32, %v565_v31  ;;  %v554_v43 = vld [vmem:[#allocation7 + $0xa8] sm:$0xff]  ;;  %p1229_p13 = por %p1228_p12, %p1227_p11 }
  0x5a   :  { %1032 = vmatpush3.bf16.msra.mxu1 %v1031_v45  ;;  %v567_v45 = vld [vmem:[#allocation7 + $0x110] sm:$0xff]  ;;  %v568_v46 = vld [vmem:[#allocation7 + $0x118] sm:$0xff]  ;;  %v1083_v47 = vpack.c.bf16 %v536_v40, %v535_v38  ;;  %v585_v48 = vld [vmem:[#allocation7 + $0x1a0] sm:$0xff]  ;;  %v1085_v50 = vpack.c.bf16 %v554_v43, %v553_v42 }
  0x5b   :  { %1065 = vmatprep.subr.bf16.mxu1 %v1303_v0  ;;  %v586_v49 = vld [vmem:[#allocation7 + $0x1a8] sm:$0xff]  ;;  %v537_v51 = vld [vmem:[#allocation7 + $0x20] sm:$0xff]  ;;  %v1115_v53 = vpack.c.bf16 %v568_v46, %v567_v45  ;;  %v556_v56 = vld [vmem:[#allocation7 + $0xb8] sm:$0xff]  ;;  %p1230_p0 = pnand %p1229_p13, %p1223_p10 }
  0x5c   :  { %1052 = vmatpush3.bf16.msra.mxu0 %v1051_v52  ;;  %v538_v52 = vld [vmem:[#allocation7 + $0x28] sm:$0xff]  ;;  %v1117_v58 = vpack.c.bf16 %v586_v49, %v585_v48  ;;  %v587_v62 = vld [vmem:[#allocation7 + $0x1b0] sm:$0xff]  ;;  %v557_v5 = vld [vmem:[#allocation7 + $0xc0] sm:$0xff] }
  0x5d   :  { %368 = vmatmul.mubr.f32.vlgmr.msra.gmra.mrb[0].mxu1 %v1441_v54  ;;  %1054 = vmatprep.subr.bf16.mxu0 %v1053_v55  ;;  %v555_v55 = vld [vmem:[#allocation7 + $0xb0] sm:$0xff]  ;;  %v570_v60 = vld [vmem:[#allocation7 + $0x128] sm:$0xff]  ;;  %v1087_v61 = vpack.c.bf16 %v538_v52, %v537_v51  ;;  %v589_v10 = vld [vmem:[#allocation7 + $0x1c0] sm:$0xff] }
  0x5e   :  { %1067 = vmatpush3.bf16.msra.mxu1 %v1066_v59  ;;  %986 = vmatprep.mubr.msk.f32.mxu1 %vm1304_vm0, %v1305_v1  ;;  %v450_v1 = vld [vmem:[#allocation5 + $0x278] sm:$0xff]  ;;  %v569_v59 = vld [vmem:[#allocation7 + $0x120] sm:$0xff]  ;;  %v1089_v63 = vpack.c.bf16 %v556_v56, %v555_v55  ;;  %v539_v2 = vld [vmem:[#allocation7 + $0x30] sm:$0xff] }
  0x5f   :  { %1068 = vmatprep.subr.bf16.mxu1 %v1303_v0  ;;  %v1075_v26 = vpack.c.bf16 %v450_v1, %v449_v19  ;;  %v558_v6 = vld [vmem:[#allocation7 + $0xc8] sm:$0xff]  ;;  %v559_v16 = vld [vmem:[#allocation7 + $0xd0] sm:$0xff]  ;;  %v573_v18 = vld [vmem:[#allocation7 + $0x140] sm:$0xff] }
  0x60   :  { %1056 = vmatpush3.bf16.msra.mxu0 %v1055_v3  ;;  %v540_v3 = vld [vmem:[#allocation7 + $0x38] sm:$0xff]  ;;  %v590_v11 = vld [vmem:[#allocation7 + $0x1c8] sm:$0xff]  ;;  %v1093_v12 = vpack.c.bf16 %v558_v6, %v557_v5  ;;  %v579_v55 = vld [vmem:[#allocation7 + $0x170] sm:$0xff] }
  0x61   :  { %1058 = vmatprep.subr.bf16.mxu0 %v1057_v4  ;;  %v1119_v4 = vpack.c.bf16 %v570_v60, %v569_v59  ;;  %v1091_v9 = vpack.c.bf16 %v540_v3, %v539_v2  ;;  %v1125_v17 = vpack.c.bf16 %v590_v11, %v589_v10  ;;  %v574_v19 = vld [vmem:[#allocation7 + $0x148] sm:$0xff]  ;;  %v592_v21 = vld [vmem:[#allocation7 + $0x1d8] sm:$0xff] }
  0x62   :  { %1070 = vmatpush3.bf16.msra.mxu1 %v1069_v8  ;;  %v571_v8 = vld [vmem:[#allocation7 + $0x130] sm:$0xff]  ;;  %v544_v24 = vld [vmem:[#allocation7 + $0x58] sm:$0xff]  ;;  %v1127_v25 = vpack.c.bf16 %v574_v19, %v573_v18  ;;  %v562_v27 = vld [vmem:[#allocation7 + $0xe8] sm:$0xff] }
  0x63   :  { %1071 = vmatprep.subr.bf16.mxu1 %v1303_v0  ;;  %v576_v31 = vld [vmem:[#allocation7 + $0x158] sm:$0xff]  ;;  %v546_v38 = vld [vmem:[#allocation7 + $0x68] sm:$0xff] }
  0x64   :  { %1060 = vmatpush3.bf16.msra.mxu0 %v1059_v13  ;;  %v541_v13 = vld [vmem:[#allocation7 + $0x40] sm:$0xff]  ;;  %v564_v42 = vld [vmem:[#allocation7 + $0xf8] sm:$0xff]  ;;  %v578_v45 = vld [vmem:[#allocation7 + $0x168] sm:$0xff] }
  0x65   :  { %1062 = vmatprep.subr.bf16.mxu0 %v1061_v14  ;;  %v542_v14 = vld [vmem:[#allocation7 + $0x48] sm:$0xff]  ;;  %v596_v48 = vld [vmem:[#allocation7 + $0x1f8] sm:$0xff] }
  0x66   :  { %1073 = vmatpush3.bf16.msra.mxu1 %v1072_v36  ;;  %v560_v36 = vld [vmem:[#allocation7 + $0xd8] sm:$0xff]  ;;  %v1095_v1 = vpack.c.bf16 %v542_v14, %v541_v13 }
  0x67   :  { %1074 = vmatprep.subr.bf16.mxu1 %v1303_v0  ;;  %v1113_v0 = vpack.c.bf16 %v584_v35, %v583_v34  ;;  %v1097_v22 = vpack.c.bf16 %v560_v36, %v559_v16  ;;  %v594_v34 = vld [vmem:[#allocation7 + $0x1e8] sm:$0xff]  ;;  %v548_v51 = vld [vmem:[#allocation7 + $0x78] sm:$0xff] }
  0x68   :  { %1064 = vmatpush3.bf16.msra.mxu0 %v1063_v20  ;;  %v591_v20 = vld [vmem:[#allocation7 + $0x1d0] sm:$0xff]  ;;  %v580_v56 = vld [vmem:[#allocation7 + $0x178] sm:$0xff] }
  0x69   :  { %1078 = vmatprep.subr.bf16.mxu0 %v1077_v23  ;;  %v543_v23 = vld [vmem:[#allocation7 + $0x50] sm:$0xff]  ;;  %v1129_v28 = vpack.c.bf16 %v592_v21, %v591_v20  ;;  %v1139_v59 = vpack.c.bf16 %v580_v56, %v579_v55 }
  0x6a   :  { %1076 = vmatpush3.bf16.msra.mxu1 %v1075_v26  ;;  %v561_v26 = vld [vmem:[#allocation7 + $0xe0] sm:$0xff]  ;;  %v1099_v32 = vpack.c.bf16 %v544_v24, %v543_v23 }
  0x6b   :  { %438 = vmatmul.mubr.f32.vlgmr.msra.gmra.mrb[2].mxu0 %v1455_v29  ;;  %1110 = vmatprep.subr.bf16.mxu1 %v1109_v30  ;;  %v575_v30 = vld [vmem:[#allocation7 + $0x150] sm:$0xff]  ;;  %v1101_v35 = vpack.c.bf16 %v562_v27, %v561_v26 }
  0x6c   :  { %1080 = vmatpush3.bf16.msra.mxu0 %v1079_v33  ;;  %668 = vmatprep.mubr.f32.mxu0 %v1426_v39  ;;  %v588_v39 = vld [vmem:[#allocation7 + $0x1b8] sm:$0xff]  ;;  %v593_v33 = vld [vmem:[#allocation7 + $0x1e0] sm:$0xff]  ;;  %v1131_v40 = vpack.c.bf16 %v576_v31, %v575_v30 }
  0x6d   :  { %987 = vmatmul.mubr.msk.f32.vlgmr.msra.gmra.mrb[2].mxu1 %vm128_vm1, %v124_v7  ;;  %1082 = vmatprep.subr.bf16.mxu0 %v1081_v37  ;;  %v1121_v7 = vpack.c.bf16 %v588_v39, %v587_v62  ;;  %v545_v37 = vld [vmem:[#allocation7 + $0x60] sm:$0xff]  ;;  %v1133_v43 = vpack.c.bf16 %v594_v34, %v593_v33 }
  0x6e   :  { %1112 = vmatpush3.bf16.msra.mxu1 %v1111_v41  ;;  %738 = vmatprep.mubr.f32.mxu1 %v1431_v44  ;;  %v572_v44 = vld [vmem:[#allocation7 + $0x138] sm:$0xff]  ;;  %v563_v41 = vld [vmem:[#allocation7 + $0xf0] sm:$0xff]  ;;  %v1103_v46 = vpack.c.bf16 %v546_v38, %v545_v37 }
  0x6f   :  { %1114 = vmatprep.subr.bf16.mxu1 %v1113_v0  ;;  %v1123_v15 = vpack.c.bf16 %v572_v44, %v571_v8  ;;  %v577_v0 = vld [vmem:[#allocation7 + $0x160] sm:$0xff]  ;;  %v1105_v49 = vpack.c.bf16 %v564_v42, %v563_v41 }
  0x70   :  { %1084 = vmatpush3.bf16.msra.mxu0 %v1083_v47  ;;  %v595_v47 = vld [vmem:[#allocation7 + $0x1f0] sm:$0xff]  ;;  %v1135_v52 = vpack.c.bf16 %v578_v45, %v577_v0 }
  0x71   :  { %1086 = vmatprep.subr.bf16.mxu0 %v1085_v50  ;;  %v547_v50 = vld [vmem:[#allocation7 + $0x70] sm:$0xff] }
  0x72   :  { %1116 = vmatpush3.bf16.msra.mxu1 %v1115_v53  ;;  %v1137_v53 = vpack.c.bf16 %v596_v48, %v595_v47 }
  0x73   :  { %1118 = vmatprep.subr.bf16.mxu1 %v1117_v58  ;;  %v1107_v58 = vpack.c.bf16 %v548_v51, %v547_v50 }
  0x74   :  { %1088 = vmatpush3.bf16.msra.mxu0 %v1087_v61 }
  0x75   :  { %1090 = vmatprep.subr.bf16.mxu0 %v1089_v63 }
  0x76   :  { %1120 = vmatpush3.bf16.msra.mxu1 %v1119_v4 }
  0x77   :  { %1122 = vmatprep.subr.bf16.mxu1 %v1121_v7 }
  0x78   :  { %1092 = vmatpush3.bf16.msra.mxu0 %v1091_v9 }
  0x79   :  { %1094 = vmatprep.subr.bf16.mxu0 %v1093_v12 }
  0x7a   :  { %1124 = vmatpush3.bf16.msra.mxu1 %v1123_v15 }
  0x7b   :  { %1126 = vmatprep.subr.bf16.mxu1 %v1125_v17 }
  0x7c   :  { %1096 = vmatpush3.bf16.msra.mxu0 %v1095_v1 }
  0x7d   :  { %1098 = vmatprep.subr.bf16.mxu0 %v1097_v22 }
  0x7e   :  { %1128 = vmatpush3.bf16.msra.mxu1 %v1127_v25 }
  0x7f   :  { %1130 = vmatprep.subr.bf16.mxu1 %v1129_v28 }
  0x80   :  { %1100 = vmatpush3.bf16.msra.mxu0 %v1099_v32 }
  0x81   :  { %1102 = vmatprep.subr.bf16.mxu0 %v1101_v35 }
  0x82   :  { %1132 = vmatpush3.bf16.msra.mxu1 %v1131_v40 }
  0x83   :  { %1134 = vmatprep.subr.bf16.mxu1 %v1133_v43 }
  0x84   :  { %1104 = vmatpush3.bf16.msra.mxu0 %v1103_v46 }
  0x85   :  { %1106 = vmatprep.subr.bf16.mxu0 %v1105_v49 }
  0x86   :  { %1136 = vmatpush3.bf16.msra.mxu1 %v1135_v52 }
  0x87   :  { %1138 = vmatprep.subr.bf16.mxu1 %v1137_v53 }
  0x88   :  { %1108 = vmatpush3.bf16.msra.mxu0 %v1107_v58 }
  0x8a   :  { %1140 = vmatpush3.bf16.msra.mxu1 %v1139_v59 }
  0x8b   :  { %669 = vmatmul.mubr.f32.vlgmr.msra.gmra.mrb[4].mxu0 %v1441_v54 }
  0x8d   :  { %739 = vmatmul.mubr.f32.vlgmr.msra.gmra.mrb[4].mxu1 %v1455_v29 }
  0xc8   :  { %v126_v60 = vpop.permute.xlu0 %125 }
  0xc9   :  { %v129_v61 = vsel %vm128_vm1, %v1420_v57, %v126_v60 }
  0xca   :  { %130 = vst [vmem:[#allocation8 + $0x8] sm:$0x3] %v129_v61 }
  0xcb   :  { %1233 = shalt.err (!%p1230_p0)
}
  0xcc   :  { %s1234_s14 = scalar_lea.hbm %s1514_s7, 160 }
  0xcd   :  { %p1235_p1 = scmp.ne.s32.totalorder %s1514_s7, %s1234_s14  ;;  %p1238_p2 = scmp.lt.u32.totalorder %s1234_s14, %s1514_s7 }
  0xcf   :  { %p1240_p3 = pnand %p1238_p2, %p1235_p1 }
  0xd1   :  { %1243 = shalt.err (!%p1240_p3)
}
  0xd2   :  { %754 = dma.vmem_to_hbm [thread:$0]  %s752_s12, 160, %s1514_s7, [#allocation4]   ;;  %v791_v8 = vld [vmem:[%s1511_s4] ss:$0 sm:$0xff] }
  0xd3   :  { %s1308_s26 = smov [#allocation9]  }
  0xd4   :  { %s761_s27 = sshll.u32 %s1308_s26, 4  ;;  %s762_s27 = int_to_ptr.vmem [resolvable:$true] %s761_s27 }
  0xd5   :  { %s1244_s7 = scalar_lea.vmem %s762_s27, 32  ;;  %p1249_p5 = scmp.lt.s32.totalorder %s762_s27, %s762_s27 }
  0xd6   :  { %p1245_p4 = scmp.ne.s32.totalorder %s762_s27, %s1244_s7  ;;  %p1250_p6 = scmp.lt.s32.totalorder %s1244_s7, %s1244_s7 }
  0xd8   :  { %p1251_p7 = por %p1250_p6, %p1249_p5 }
  0xda   :  { %p1252_p8 = pnand %p1251_p7, %p1245_p4 }
 0x11e   :  { %v271_v57 = vpop.f32.mrb[0].mxu0 }
 0x11f   :  { %v969_v54 = vpop.f32.mrb[1].mxu0 }
 0x130   :  { %v834_v29 = vpop.f32.mrb[0].mxu1 }
 0x131   :  { %v835_v62 = vpop.f32.mrb[1].mxu1 }
 0x132   :  { %v836_v39 = vadd.f32 %v835_v62, %v834_v29 }
 0x134   :  { %v370_v63 = vadd.f32 %v836_v39, %v271_v57 }
 0x13e   :  { %v869_v2 = vpop.f32.mrb[2].mxu0 }
 0x13f   :  { %v870_v3 = vpop.f32.mrb[3].mxu0 }
 0x140   :  { %v871_v4 = vadd.f32 %v870_v3, %v869_v2  ;;  %v519_v5 = vpop.f32.mrb[2].mxu1 }
 0x141   :  { %v988_v6 = vpop.f32.mrb[3].mxu1 }
 0x142   :  { %v440_v7 = vadd.f32 %v871_v4, %v370_v63 }
 0x144   :  { %v523_v44 = vadd.f32 %v519_v5, %v440_v7 }
 0x146   :  { %v531_v9 = vadd.f32 %v791_v8, %v523_v44 }
 0x148   :  { %532 = vst [vmem:[#allocation9] sm:$0x3] %v531_v9 }
 0x149   :  { %1255 = shalt.err (!%p1252_p8)
}
 0x14a   :  { %s1256_s5 = scalar_lea.hbm %s1515_s8, 32 }
 0x14b   :  { %p1257_p9 = scmp.ne.s32.totalorder %s1515_s8, %s1256_s5  ;;  %p1260_p10 = scmp.lt.u32.totalorder %s1256_s5, %s1515_s8 }
 0x14d   :  { %p1262_p11 = pnand %p1260_p10, %p1257_p9 }
 0x14f   :  { %1265 = shalt.err (!%p1262_p11)
}
 0x150   :  { %764 = dma.vmem_to_hbm [thread:$0]  %s762_s27, 32, %s1515_s8, [#allocation10]   ;;  %v792_v11 = vld [vmem:[%s1513_s6] ss:$0 sm:$0xff] }
 0x151   :  { %s1309_s2 = smov [#allocation11]  }
 0x152   :  { %s771_s12 = sshll.u32 %s1309_s2, 4  ;;  %s772_s12 = int_to_ptr.vmem [resolvable:$true] %s771_s12 }
 0x153   :  { %s1266_s3 = scalar_lea.vmem %s772_s12, 32  ;;  %p1271_p13 = scmp.lt.s32.totalorder %s772_s12, %s772_s12 }
 0x154   :  { %p1267_p12 = scmp.ne.s32.totalorder %s772_s12, %s1266_s3  ;;  %p1272_p0 = scmp.lt.s32.totalorder %s1266_s3, %s1266_s3 }
 0x156   :  { %p1273_p1 = por %p1272_p0, %p1271_p13 }
 0x158   :  { %p1274_p2 = pnand %p1273_p1, %p1267_p12 }
 0x15e   :  { %v913_v10 = vpop.f32.mrb[4].mxu0 }
 0x15f   :  { %v914_v12 = vpop.f32.mrb[5].mxu0 }
 0x160   :  { %v915_v13 = vadd.f32 %v914_v12, %v913_v10  ;;  %v948_v14 = vpop.f32.mrb[4].mxu1 }
 0x161   :  { %v949_v15 = vpop.f32.mrb[5].mxu1 }
 0x162   :  { %v671_v16 = vadd.f32 %v915_v13, %v792_v11  ;;  %v950_v36 = vadd.f32 %v949_v15, %v948_v14 }
 0x164   :  { %v741_v17 = vadd.f32 %v950_v36, %v671_v16 }
 0x166   :  { %744 = vst [vmem:[#allocation11] sm:$0x3] %v741_v17 }
 0x167   :  { %1277 = shalt.err (!%p1274_p2)
}
 0x168   :  { %s1278_s10 = scalar_lea.hbm %s1516_s9, 32 }
 0x169   :  { %p1279_p3 = scmp.ne.s32.totalorder %s1516_s9, %s1278_s10  ;;  %p1282_p4 = scmp.lt.u32.totalorder %s1278_s10, %s1516_s9 }
 0x16b   :  { %p1284_p5 = pnand %p1282_p4, %p1279_p3 }
 0x16d   :  { %1287 = shalt.err (!%p1284_p5)
}
 0x16e   :  { %774 = dma.vmem_to_hbm [thread:$0]  %s772_s12, 32, %s1516_s9, [#allocation10]  }
 0x16f   :  { %1292 = dma.done.wait [#allocation4], 160  }
 0x170   :  { %1293 = vsyncadd [#allocation4], 4294967136 }
 0x171   :  { %1294 = dma.done.wait [#allocation10], 64  }
 0x172   :  { %1295 = vsyncadd [#allocation10], 4294967232 }
 0x173   :  { %784 = vsyncpa [#allocation3], 1 }
 0x174   :  { %785 = vsyncpa [#allocation6], 1 }
 0x175   :  { %786 = vsyncpa [#allocation4], 1 }
 0x176   :  { %787 = vsyncpa [#allocation10], 1 }

</bundles_post_ra>
